<compile_context>
chip_gen: v7x
topology: tpu7x:2x2x1
jax: 0.10.0
libtpu: 0.0.40
codegen_flags: <defaults>
</compile_context>

<pallas_src>
import functools

import jax
import jax.numpy as jnp
from jax.experimental import pallas as pl
from jax.experimental.pallas import tpu as pltpu


def _round_up(x, m):
    return ((x + m - 1) // m) * m


# ----------------------------------------------------------------------------
# Fused kernel: one grid step == one image (grid axis N, "parallel").
#   x_ref    : [1, C, Lp]   bf16  zero-padded, spatially flattened image
#   mask_ref : [1, S*T]     f32   1.0 on valid conv-output positions, else 0.0
#   wt_ref   : [Cm, Kp]     bf16  conv weight, k = (kh*3+kw)*C + c, zero-padded
#   cb_ref   : [Cm, 1]      f32   conv bias
#   fcw_ref  : [Cm, NC]     f32   classifier weight
#   fcb_ref  : [1, NC]      f32   classifier bias
#   o_ref    : [1, 1, NC]   f32   softmax probabilities
# ----------------------------------------------------------------------------
def fused_digit_kernel(x_ref, mask_ref, wt_ref, cb_ref, fcw_ref, fcb_ref, o_ref,
                       *, C, Wp, T, S, inv_hw):
    cm, kp = wt_ref.shape
    k_used = 9 * C

    # Lane-dense GAP accumulator (pure VALU adds per tile; one XLU reduce at end).
    acc = jnp.zeros((cm, 128), jnp.float32)

    # Statically unrolled spatial tiles of the flat conv-output axis (length S*T).
    for s in range(S):
        base = s * T

        # ---- in-kernel im2col: 9 static, contiguous, halo-shifted slices ----
        slabs = []
        for kh in range(3):
            for kw in range(3):
                c0 = base + kh * Wp + kw            # static offset (halo shift)
                slabs.append(x_ref[0, :, c0:c0 + T])            # [C, T] bf16
        if kp > k_used:                             # deliberate zero K-padding
            slabs.append(jnp.zeros((kp - k_used, T), x_ref.dtype))
        patches = jnp.concatenate(slabs, axis=0)                 # [Kp, T] bf16

        # ---- conv as ONE 2D MXU matmul, f32 accumulation + f32 epilogue ----
        conv = jnp.dot(wt_ref[...], patches,
                       preferred_element_type=jnp.float32)       # [Cm, T]
        conv = jnp.maximum(conv + cb_ref[...], 0.0)              # bias + ReLU
        conv = conv * mask_ref[:, base:base + T]                 # drop pad/junk

        # ---- fold T lanes down to 128 (VALU), accumulate ----
        part = conv[:, 0:128]
        for g in range(1, T // 128):
            part = part + conv[:, g * 128:(g + 1) * 128]
        acc = acc + part

    # ---- finalize: GAP mean, FC, softmax — all f32 (v5e-safe) ----
    feat = jnp.sum(acc, axis=-1, keepdims=True) * inv_hw         # [Cm, 1]
    logits = jnp.sum(feat * fcw_ref[...], axis=0, keepdims=True) + fcb_ref[...]
    m = jnp.max(logits, axis=-1, keepdims=True)
    e = jnp.exp(logits - m)
    probs = e / jnp.sum(e, axis=-1, keepdims=True)               # [1, NC]
    o_ref[...] = probs[None].astype(o_ref.dtype)                 # [1, 1, NC]


def digit_model_forward(x, params, *, spatial_tile_cap=16384):
    """x: [N, 3, H, W] float32 -> softmax probs [N, num_classes]."""
    N, C, H, W = x.shape
    conv_w, conv_b, fc_w, fc_b = params
    Cm = conv_w.shape[0]
    NC = fc_w.shape[1]

    Hp, Wp = H + 2, W + 2
    L = H * Wp                                   # flat conv-output length (incl. junk cols)
    cap = max(128, (spatial_tile_cap // 128) * 128)
    T = min(_round_up(L, 128), cap)              # lane-dense spatial tile
    S = pl.cdiv(L, T)                            # in-kernel (unrolled) tile count
    halo = _round_up(2 * Wp + 2, 128)            # max extra lookahead of any tap slice
    Lp = S * T + halo                            # padded flat image length (mult of 128)

    # ---- cheap (~1x-sized) host prep: pad + flatten + bf16 cast; NO 9x im2col ----
    xp = jnp.pad(x, ((0, 0), (0, 0), (1, 1), (1, 1))).reshape(N, C, Hp * Wp)
    xflat = jnp.pad(xp, ((0, 0), (0, 0), (0, Lp - Hp * Wp))).astype(jnp.bfloat16)

    # Valid-position mask over the flat conv-output axis (kills the 2 pad cols/row
    # and the round-up tail) so the GAP sums exactly H*W positions.
    j = jnp.arange(S * T)
    mask = (((j % Wp) < W) & (j < L)).astype(jnp.float32).reshape(1, S * T)

    # Conv weight -> [Cm, Kp] with k = (kh*3+kw)*C + c, explicitly zero-padded.
    Kp = _round_up(9 * C, 8)
    wt = conv_w.transpose(0, 2, 3, 1).reshape(Cm, 9 * C)
    wt = jnp.pad(wt, ((0, 0), (0, Kp - 9 * C))).astype(jnp.bfloat16)
    cb = conv_b.reshape(Cm, 1).astype(jnp.float32)
    fcw = fc_w.astype(jnp.float32)
    fcb = fc_b.reshape(1, NC).astype(jnp.float32)

    cost = pl.CostEstimate(
        flops=2 * N * S * T * Kp * Cm + N * Cm * S * T + 2 * N * Cm * NC,
        transcendentals=N * NC,
        bytes_accessed=(xflat.size * 2 + mask.size * 4 + wt.size * 2
                        + (cb.size + fcw.size + fcb.size + N * NC) * 4),
    )

    kernel = functools.partial(fused_digit_kernel, C=C, Wp=Wp, T=T, S=S,
                               inv_hw=1.0 / float(H * W))

    out = pl.pallas_call(
        kernel,
        out_shape=jax.ShapeDtypeStruct((N, 1, NC), jnp.float32),
        grid=(N,),
        in_specs=[
            pl.BlockSpec((1, C, Lp), lambda n: (n, 0, 0)),   # whole padded image / step
            pl.BlockSpec((1, S * T), lambda n: (0, 0)),      # valid-position mask
            pl.BlockSpec((Cm, Kp), lambda n: (0, 0)),        # conv weight
            pl.BlockSpec((Cm, 1), lambda n: (0, 0)),         # conv bias
            pl.BlockSpec((Cm, NC), lambda n: (0, 0)),        # fc weight
            pl.BlockSpec((1, NC), lambda n: (0, 0)),         # fc bias
        ],
        out_specs=pl.BlockSpec((1, 1, NC), lambda n: (n, 0, 0)),
        compiler_params=pltpu.CompilerParams(
            dimension_semantics=("parallel",)),              # batch axis -> 2 TCs on v7x
        cost_estimate=cost,
    )(xflat, mask, wt, cb, fcw, fcb)
    return out[:, 0, :]


def reference_forward(x, params):
    """Pure-JAX f32 reference for correctness checking."""
    conv_w, conv_b, fc_w, fc_b = params
    y = jax.lax.conv_general_dilated(
        x, conv_w, window_strides=(1, 1), padding="SAME",
        dimension_numbers=("NCHW", "OIHW", "NCHW"))
    y = jnp.maximum(y + conv_b[None, :, None, None], 0.0)
    feat = jnp.mean(y, axis=(2, 3))
    logits = feat @ fc_w + fc_b
    return jax.nn.softmax(logits, axis=-1)


def init_params(key, in_chans=3, c_mid=32, num_classes=10):
    k1, k2, k3, k4 = jax.random.split(key, 4)
    conv_w = jax.random.normal(k1, (c_mid, in_chans, 3, 3), jnp.float32) * 0.1
    conv_b = jax.random.normal(k2, (c_mid,), jnp.float32) * 0.01
    fc_w = jax.random.normal(k3, (c_mid, num_classes), jnp.float32) * 0.1
    fc_b = jax.random.normal(k4, (num_classes,), jnp.float32) * 0.01
    return conv_w, conv_b, fc_w, fc_b


if __name__ == "__main__":
    key = jax.random.PRNGKey(0)
    kx, kp = jax.random.split(key)

    N, C, H, W = 2, 3, 16, 16          # in_chans=3 per DigitModel
    num_classes = 10

    x = jax.random.normal(kx, (N, C, H, W), jnp.float32)
    params = init_params(kp, in_chans=C, c_mid=32, num_classes=num_classes)

    ref = reference_forward(x, params)

    # Multi-tile path: spatial_tile_cap=128 at this demo size gives S=3 unrolled
    # spatial tiles per image, exercising the tiled im2col + lane-dense acc path.
    fwd_tiled = jax.jit(functools.partial(digit_model_forward, spatial_tile_cap=128))
    probs_tiled = jax.block_until_ready(fwd_tiled(x, params))

    # Default path: one tile covers the whole image (what real sizes <=~128px hit).
    fwd = jax.jit(digit_model_forward)
    probs = jax.block_until_ready(fwd(x, params))

    for p in (probs_tiled, probs):
        assert p.shape == (N, num_classes)
        # softmax rows must sum to 1
        assert jnp.allclose(jnp.sum(p, axis=-1), 1.0, atol=1e-5)
        # bf16 matmul operands vs f32 reference -> generous tolerance (intentional).
        assert jnp.allclose(p, ref, atol=2e-2), (
            f"max abs err {float(jnp.max(jnp.abs(p - ref)))}")

    print("KERNEL_OK")
</pallas_src>

<mosaic_0001>
module attributes {stable_mosaic.version = 11 : i64} {
  func.func @fused_digit_kernel(%arg0: i32, %arg1: memref<1x3x512xbf16, #tpu.memory_space<vmem>>, %arg2: memref<1x384xf32, #tpu.memory_space<vmem>>, %arg3: memref<32x32xbf16, #tpu.memory_space<vmem>>, %arg4: memref<32x1xf32, #tpu.memory_space<vmem>>, %arg5: memref<32x10xf32, #tpu.memory_space<vmem>>, %arg6: memref<1x10xf32, #tpu.memory_space<vmem>>, %arg7: memref<1x1x10xf32, #tpu.memory_space<vmem>>) attributes {dimension_semantics = [#tpu.dimension_semantics<parallel>], iteration_bounds = array<i64: 2>, scalar_prefetch = 0 : i64, scratch_operands = 0 : i64, tpu.core_type = #tpu.core_type<tc>, window_params = [{transform_indices = @transform_0, window_bounds = array<i64: 1, 3, 512>}, {pipeline_mode = #tpu.pipeline_mode<synchronous>, transform_indices = @transform_1, window_bounds = array<i64: 1, 384>}, {pipeline_mode = #tpu.pipeline_mode<synchronous>, transform_indices = @transform_2, window_bounds = array<i64: 32, 32>}, {pipeline_mode = #tpu.pipeline_mode<synchronous>, transform_indices = @transform_3, window_bounds = array<i64: 32, 1>}, {pipeline_mode = #tpu.pipeline_mode<synchronous>, transform_indices = @transform_4, window_bounds = array<i64: 32, 10>}, {pipeline_mode = #tpu.pipeline_mode<synchronous>, transform_indices = @transform_5, window_bounds = array<i64: 1, 10>}, {transform_indices = @transform_6, window_bounds = array<i64: 1, 1, 10>}]} {
    %cst = arith.constant 0.000000e+00 : f32
    %0 = vector.broadcast %cst : f32 to vector<32x128xf32>
    %c0 = arith.constant 0 : index
    %c0_0 = arith.constant 0 : index
    %c0_1 = arith.constant 0 : index
    %1 = vector.load %arg1[%c0, %c0_0, %c0_1] : memref<1x3x512xbf16, #tpu.memory_space<vmem>>, vector<1x3x128xbf16>
    %2 = vector.shape_cast %1 : vector<1x3x128xbf16> to vector<3x128xbf16>
    %c0_2 = arith.constant 0 : index
    %c0_3 = arith.constant 0 : index
    %c1 = arith.constant 1 : index
    %3 = vector.load %arg1[%c0_2, %c0_3, %c1] : memref<1x3x512xbf16, #tpu.memory_space<vmem>>, vector<1x3x128xbf16>
    %4 = vector.shape_cast %3 : vector<1x3x128xbf16> to vector<3x128xbf16>
    %c0_4 = arith.constant 0 : index
    %c0_5 = arith.constant 0 : index
    %c2 = arith.constant 2 : index
    %5 = vector.load %arg1[%c0_4, %c0_5, %c2] : memref<1x3x512xbf16, #tpu.memory_space<vmem>>, vector<1x3x128xbf16>
    %6 = vector.shape_cast %5 : vector<1x3x128xbf16> to vector<3x128xbf16>
    %c0_6 = arith.constant 0 : index
    %c0_7 = arith.constant 0 : index
    %c18 = arith.constant 18 : index
    %7 = vector.load %arg1[%c0_6, %c0_7, %c18] : memref<1x3x512xbf16, #tpu.memory_space<vmem>>, vector<1x3x128xbf16>
    %8 = vector.shape_cast %7 : vector<1x3x128xbf16> to vector<3x128xbf16>
    %c0_8 = arith.constant 0 : index
    %c0_9 = arith.constant 0 : index
    %c19 = arith.constant 19 : index
    %9 = vector.load %arg1[%c0_8, %c0_9, %c19] : memref<1x3x512xbf16, #tpu.memory_space<vmem>>, vector<1x3x128xbf16>
    %10 = vector.shape_cast %9 : vector<1x3x128xbf16> to vector<3x128xbf16>
    %c0_10 = arith.constant 0 : index
    %c0_11 = arith.constant 0 : index
    %c20 = arith.constant 20 : index
    %11 = vector.load %arg1[%c0_10, %c0_11, %c20] : memref<1x3x512xbf16, #tpu.memory_space<vmem>>, vector<1x3x128xbf16>
    %12 = vector.shape_cast %11 : vector<1x3x128xbf16> to vector<3x128xbf16>
    %c0_12 = arith.constant 0 : index
    %c0_13 = arith.constant 0 : index
    %c36 = arith.constant 36 : index
    %13 = vector.load %arg1[%c0_12, %c0_13, %c36] : memref<1x3x512xbf16, #tpu.memory_space<vmem>>, vector<1x3x128xbf16>
    %14 = vector.shape_cast %13 : vector<1x3x128xbf16> to vector<3x128xbf16>
    %c0_14 = arith.constant 0 : index
    %c0_15 = arith.constant 0 : index
    %c37 = arith.constant 37 : index
    %15 = vector.load %arg1[%c0_14, %c0_15, %c37] : memref<1x3x512xbf16, #tpu.memory_space<vmem>>, vector<1x3x128xbf16>
    %16 = vector.shape_cast %15 : vector<1x3x128xbf16> to vector<3x128xbf16>
    %c0_16 = arith.constant 0 : index
    %c0_17 = arith.constant 0 : index
    %c38 = arith.constant 38 : index
    %17 = vector.load %arg1[%c0_16, %c0_17, %c38] : memref<1x3x512xbf16, #tpu.memory_space<vmem>>, vector<1x3x128xbf16>
    %18 = vector.shape_cast %17 : vector<1x3x128xbf16> to vector<3x128xbf16>
    %cst_18 = arith.constant 0.000000e+00 : bf16
    %19 = vector.broadcast %cst_18 : bf16 to vector<5x128xbf16>
    %20 = tpu.concatenate %2, %4, %6, %8, %10, %12, %14, %16, %18, %19 in 0 : vector<3x128xbf16>, vector<3x128xbf16>, vector<3x128xbf16>, vector<3x128xbf16>, vector<3x128xbf16>, vector<3x128xbf16>, vector<3x128xbf16>, vector<3x128xbf16>, vector<3x128xbf16>, vector<5x128xbf16> -> vector<32x128xbf16>
    %c0_19 = arith.constant 0 : index
    %c0_20 = arith.constant 0 : index
    %21 = vector.load %arg3[%c0_19, %c0_20] : memref<32x32xbf16, #tpu.memory_space<vmem>>, vector<32x32xbf16>
    %cst_21 = arith.constant dense<0.000000e+00> : vector<32x128xf32>
    %22 = tpu.matmul %21, %20, %cst_21 {dimension_numbers = #tpu.dot_dimension_numbers<[1], [0], [0], [1], [0, 0, 1, 1], [], []>} : vector<32x32xbf16>, vector<32x128xbf16>, vector<32x128xf32> -> vector<32x128xf32>
    %c0_22 = arith.constant 0 : index
    %c0_23 = arith.constant 0 : index
    %23 = vector.load %arg4[%c0_22, %c0_23] : memref<32x1xf32, #tpu.memory_space<vmem>>, vector<32x1xf32>
    %24 = vector.broadcast %23 : vector<32x1xf32> to vector<32x128xf32>
    %25 = arith.addf %22, %24 : vector<32x128xf32>
    %cst_24 = arith.constant 0.000000e+00 : f32
    %26 = vector.broadcast %cst_24 : f32 to vector<32x128xf32>
    %27 = arith.maximumf %25, %26 : vector<32x128xf32>
    %c0_25 = arith.constant 0 : index
    %c0_26 = arith.constant 0 : index
    %28 = vector.load %arg2[%c0_25, %c0_26] : memref<1x384xf32, #tpu.memory_space<vmem>>, vector<1x128xf32>
    %29 = vector.broadcast %28 : vector<1x128xf32> to vector<32x128xf32>
    %30 = arith.mulf %27, %29 : vector<32x128xf32>
    %31 = arith.addf %0, %30 : vector<32x128xf32>
    %c0_27 = arith.constant 0 : index
    %c0_28 = arith.constant 0 : index
    %c128 = arith.constant 128 : index
    %32 = vector.load %arg1[%c0_27, %c0_28, %c128] : memref<1x3x512xbf16, #tpu.memory_space<vmem>>, vector<1x3x128xbf16>
    %33 = vector.shape_cast %32 : vector<1x3x128xbf16> to vector<3x128xbf16>
    %c0_29 = arith.constant 0 : index
    %c0_30 = arith.constant 0 : index
    %c129 = arith.constant 129 : index
    %34 = vector.load %arg1[%c0_29, %c0_30, %c129] : memref<1x3x512xbf16, #tpu.memory_space<vmem>>, vector<1x3x128xbf16>
    %35 = vector.shape_cast %34 : vector<1x3x128xbf16> to vector<3x128xbf16>
    %c0_31 = arith.constant 0 : index
    %c0_32 = arith.constant 0 : index
    %c130 = arith.constant 130 : index
    %36 = vector.load %arg1[%c0_31, %c0_32, %c130] : memref<1x3x512xbf16, #tpu.memory_space<vmem>>, vector<1x3x128xbf16>
    %37 = vector.shape_cast %36 : vector<1x3x128xbf16> to vector<3x128xbf16>
    %c0_33 = arith.constant 0 : index
    %c0_34 = arith.constant 0 : index
    %c146 = arith.constant 146 : index
    %38 = vector.load %arg1[%c0_33, %c0_34, %c146] : memref<1x3x512xbf16, #tpu.memory_space<vmem>>, vector<1x3x128xbf16>
    %39 = vector.shape_cast %38 : vector<1x3x128xbf16> to vector<3x128xbf16>
    %c0_35 = arith.constant 0 : index
    %c0_36 = arith.constant 0 : index
    %c147 = arith.constant 147 : index
    %40 = vector.load %arg1[%c0_35, %c0_36, %c147] : memref<1x3x512xbf16, #tpu.memory_space<vmem>>, vector<1x3x128xbf16>
    %41 = vector.shape_cast %40 : vector<1x3x128xbf16> to vector<3x128xbf16>
    %c0_37 = arith.constant 0 : index
    %c0_38 = arith.constant 0 : index
    %c148 = arith.constant 148 : index
    %42 = vector.load %arg1[%c0_37, %c0_38, %c148] : memref<1x3x512xbf16, #tpu.memory_space<vmem>>, vector<1x3x128xbf16>
    %43 = vector.shape_cast %42 : vector<1x3x128xbf16> to vector<3x128xbf16>
    %c0_39 = arith.constant 0 : index
    %c0_40 = arith.constant 0 : index
    %c164 = arith.constant 164 : index
    %44 = vector.load %arg1[%c0_39, %c0_40, %c164] : memref<1x3x512xbf16, #tpu.memory_space<vmem>>, vector<1x3x128xbf16>
    %45 = vector.shape_cast %44 : vector<1x3x128xbf16> to vector<3x128xbf16>
    %c0_41 = arith.constant 0 : index
    %c0_42 = arith.constant 0 : index
    %c165 = arith.constant 165 : index
    %46 = vector.load %arg1[%c0_41, %c0_42, %c165] : memref<1x3x512xbf16, #tpu.memory_space<vmem>>, vector<1x3x128xbf16>
    %47 = vector.shape_cast %46 : vector<1x3x128xbf16> to vector<3x128xbf16>
    %c0_43 = arith.constant 0 : index
    %c0_44 = arith.constant 0 : index
    %c166 = arith.constant 166 : index
    %48 = vector.load %arg1[%c0_43, %c0_44, %c166] : memref<1x3x512xbf16, #tpu.memory_space<vmem>>, vector<1x3x128xbf16>
    %49 = vector.shape_cast %48 : vector<1x3x128xbf16> to vector<3x128xbf16>
    %cst_45 = arith.constant 0.000000e+00 : bf16
    %50 = vector.broadcast %cst_45 : bf16 to vector<5x128xbf16>
    %51 = tpu.concatenate %33, %35, %37, %39, %41, %43, %45, %47, %49, %50 in 0 : vector<3x128xbf16>, vector<3x128xbf16>, vector<3x128xbf16>, vector<3x128xbf16>, vector<3x128xbf16>, vector<3x128xbf16>, vector<3x128xbf16>, vector<3x128xbf16>, vector<3x128xbf16>, vector<5x128xbf16> -> vector<32x128xbf16>
    %c0_46 = arith.constant 0 : index
    %c0_47 = arith.constant 0 : index
    %52 = vector.load %arg3[%c0_46, %c0_47] : memref<32x32xbf16, #tpu.memory_space<vmem>>, vector<32x32xbf16>
    %cst_48 = arith.constant dense<0.000000e+00> : vector<32x128xf32>
    %53 = tpu.matmul %52, %51, %cst_48 {dimension_numbers = #tpu.dot_dimension_numbers<[1], [0], [0], [1], [0, 0, 1, 1], [], []>} : vector<32x32xbf16>, vector<32x128xbf16>, vector<32x128xf32> -> vector<32x128xf32>
    %c0_49 = arith.constant 0 : index
    %c0_50 = arith.constant 0 : index
    %54 = vector.load %arg4[%c0_49, %c0_50] : memref<32x1xf32, #tpu.memory_space<vmem>>, vector<32x1xf32>
    %55 = vector.broadcast %54 : vector<32x1xf32> to vector<32x128xf32>
    %56 = arith.addf %53, %55 : vector<32x128xf32>
    %cst_51 = arith.constant 0.000000e+00 : f32
    %57 = vector.broadcast %cst_51 : f32 to vector<32x128xf32>
    %58 = arith.maximumf %56, %57 : vector<32x128xf32>
    %c0_52 = arith.constant 0 : index
    %c128_53 = arith.constant 128 : index
    %59 = vector.load %arg2[%c0_52, %c128_53] : memref<1x384xf32, #tpu.memory_space<vmem>>, vector<1x128xf32>
    %60 = vector.broadcast %59 : vector<1x128xf32> to vector<32x128xf32>
    %61 = arith.mulf %58, %60 : vector<32x128xf32>
    %62 = arith.addf %31, %61 : vector<32x128xf32>
    %c0_54 = arith.constant 0 : index
    %c0_55 = arith.constant 0 : index
    %c256 = arith.constant 256 : index
    %63 = vector.load %arg1[%c0_54, %c0_55, %c256] : memref<1x3x512xbf16, #tpu.memory_space<vmem>>, vector<1x3x128xbf16>
    %64 = vector.shape_cast %63 : vector<1x3x128xbf16> to vector<3x128xbf16>
    %c0_56 = arith.constant 0 : index
    %c0_57 = arith.constant 0 : index
    %c257 = arith.constant 257 : index
    %65 = vector.load %arg1[%c0_56, %c0_57, %c257] : memref<1x3x512xbf16, #tpu.memory_space<vmem>>, vector<1x3x128xbf16>
    %66 = vector.shape_cast %65 : vector<1x3x128xbf16> to vector<3x128xbf16>
    %c0_58 = arith.constant 0 : index
    %c0_59 = arith.constant 0 : index
    %c258 = arith.constant 258 : index
    %67 = vector.load %arg1[%c0_58, %c0_59, %c258] : memref<1x3x512xbf16, #tpu.memory_space<vmem>>, vector<1x3x128xbf16>
    %68 = vector.shape_cast %67 : vector<1x3x128xbf16> to vector<3x128xbf16>
    %c0_60 = arith.constant 0 : index
    %c0_61 = arith.constant 0 : index
    %c274 = arith.constant 274 : index
    %69 = vector.load %arg1[%c0_60, %c0_61, %c274] : memref<1x3x512xbf16, #tpu.memory_space<vmem>>, vector<1x3x128xbf16>
    %70 = vector.shape_cast %69 : vector<1x3x128xbf16> to vector<3x128xbf16>
    %c0_62 = arith.constant 0 : index
    %c0_63 = arith.constant 0 : index
    %c275 = arith.constant 275 : index
    %71 = vector.load %arg1[%c0_62, %c0_63, %c275] : memref<1x3x512xbf16, #tpu.memory_space<vmem>>, vector<1x3x128xbf16>
    %72 = vector.shape_cast %71 : vector<1x3x128xbf16> to vector<3x128xbf16>
    %c0_64 = arith.constant 0 : index
    %c0_65 = arith.constant 0 : index
    %c276 = arith.constant 276 : index
    %73 = vector.load %arg1[%c0_64, %c0_65, %c276] : memref<1x3x512xbf16, #tpu.memory_space<vmem>>, vector<1x3x128xbf16>
    %74 = vector.shape_cast %73 : vector<1x3x128xbf16> to vector<3x128xbf16>
    %c0_66 = arith.constant 0 : index
    %c0_67 = arith.constant 0 : index
    %c292 = arith.constant 292 : index
    %75 = vector.load %arg1[%c0_66, %c0_67, %c292] : memref<1x3x512xbf16, #tpu.memory_space<vmem>>, vector<1x3x128xbf16>
    %76 = vector.shape_cast %75 : vector<1x3x128xbf16> to vector<3x128xbf16>
    %c0_68 = arith.constant 0 : index
    %c0_69 = arith.constant 0 : index
    %c293 = arith.constant 293 : index
    %77 = vector.load %arg1[%c0_68, %c0_69, %c293] : memref<1x3x512xbf16, #tpu.memory_space<vmem>>, vector<1x3x128xbf16>
    %78 = vector.shape_cast %77 : vector<1x3x128xbf16> to vector<3x128xbf16>
    %c0_70 = arith.constant 0 : index
    %c0_71 = arith.constant 0 : index
    %c294 = arith.constant 294 : index
    %79 = vector.load %arg1[%c0_70, %c0_71, %c294] : memref<1x3x512xbf16, #tpu.memory_space<vmem>>, vector<1x3x128xbf16>
    %80 = vector.shape_cast %79 : vector<1x3x128xbf16> to vector<3x128xbf16>
    %cst_72 = arith.constant 0.000000e+00 : bf16
    %81 = vector.broadcast %cst_72 : bf16 to vector<5x128xbf16>
    %82 = tpu.concatenate %64, %66, %68, %70, %72, %74, %76, %78, %80, %81 in 0 : vector<3x128xbf16>, vector<3x128xbf16>, vector<3x128xbf16>, vector<3x128xbf16>, vector<3x128xbf16>, vector<3x128xbf16>, vector<3x128xbf16>, vector<3x128xbf16>, vector<3x128xbf16>, vector<5x128xbf16> -> vector<32x128xbf16>
    %c0_73 = arith.constant 0 : index
    %c0_74 = arith.constant 0 : index
    %83 = vector.load %arg3[%c0_73, %c0_74] : memref<32x32xbf16, #tpu.memory_space<vmem>>, vector<32x32xbf16>
    %cst_75 = arith.constant dense<0.000000e+00> : vector<32x128xf32>
    %84 = tpu.matmul %83, %82, %cst_75 {dimension_numbers = #tpu.dot_dimension_numbers<[1], [0], [0], [1], [0, 0, 1, 1], [], []>} : vector<32x32xbf16>, vector<32x128xbf16>, vector<32x128xf32> -> vector<32x128xf32>
    %c0_76 = arith.constant 0 : index
    %c0_77 = arith.constant 0 : index
    %85 = vector.load %arg4[%c0_76, %c0_77] : memref<32x1xf32, #tpu.memory_space<vmem>>, vector<32x1xf32>
    %86 = vector.broadcast %85 : vector<32x1xf32> to vector<32x128xf32>
    %87 = arith.addf %84, %86 : vector<32x128xf32>
    %cst_78 = arith.constant 0.000000e+00 : f32
    %88 = vector.broadcast %cst_78 : f32 to vector<32x128xf32>
    %89 = arith.maximumf %87, %88 : vector<32x128xf32>
    %c0_79 = arith.constant 0 : index
    %c256_80 = arith.constant 256 : index
    %90 = vector.load %arg2[%c0_79, %c256_80] : memref<1x384xf32, #tpu.memory_space<vmem>>, vector<1x128xf32>
    %91 = vector.broadcast %90 : vector<1x128xf32> to vector<32x128xf32>
    %92 = arith.mulf %89, %91 : vector<32x128xf32>
    %93 = arith.addf %62, %92 : vector<32x128xf32>
    %cst_81 = arith.constant dense<0.000000e+00> : vector<32xf32>
    %94 = vector.multi_reduction <add>, %93, %cst_81 [1] : vector<32x128xf32> to vector<32xf32>
    %95 = vector.shape_cast %94 : vector<32xf32> to vector<32x1xf32>
    %cst_82 = arith.constant 3.906250e-03 : f32
    %96 = vector.broadcast %cst_82 : f32 to vector<32x1xf32>
    %97 = arith.mulf %95, %96 : vector<32x1xf32>
    %c0_83 = arith.constant 0 : index
    %c0_84 = arith.constant 0 : index
    %98 = vector.load %arg5[%c0_83, %c0_84] : memref<32x10xf32, #tpu.memory_space<vmem>>, vector<32x10xf32>
    %99 = vector.broadcast %97 : vector<32x1xf32> to vector<32x10xf32>
    %100 = arith.mulf %99, %98 : vector<32x10xf32>
    %cst_85 = arith.constant dense<0.000000e+00> : vector<10xf32>
    %101 = vector.multi_reduction <add>, %100, %cst_85 [0] : vector<32x10xf32> to vector<10xf32>
    %102 = vector.shape_cast %101 : vector<10xf32> to vector<1x10xf32>
    %c0_86 = arith.constant 0 : index
    %c0_87 = arith.constant 0 : index
    %103 = vector.load %arg6[%c0_86, %c0_87] : memref<1x10xf32, #tpu.memory_space<vmem>>, vector<1x10xf32>
    %104 = arith.addf %102, %103 : vector<1x10xf32>
    %cst_88 = arith.constant dense<0xFF800000> : vector<1xf32>
    %105 = vector.multi_reduction <maximumf>, %104, %cst_88 [1] : vector<1x10xf32> to vector<1xf32>
    %106 = vector.shape_cast %105 : vector<1xf32> to vector<1x1xf32>
    %107 = vector.broadcast %106 : vector<1x1xf32> to vector<1x10xf32>
    %108 = arith.subf %104, %107 : vector<1x10xf32>
    %109 = math.exp %108 : vector<1x10xf32>
    %cst_89 = arith.constant dense<0.000000e+00> : vector<1xf32>
    %110 = vector.multi_reduction <add>, %109, %cst_89 [1] : vector<1x10xf32> to vector<1xf32>
    %111 = vector.shape_cast %110 : vector<1xf32> to vector<1x1xf32>
    %112 = vector.broadcast %111 : vector<1x1xf32> to vector<1x10xf32>
    %113 = arith.divf %109, %112 : vector<1x10xf32>
    %114 = vector.shape_cast %113 : vector<1x10xf32> to vector<1x1x10xf32>
    %c0_90 = arith.constant 0 : index
    %c0_91 = arith.constant 0 : index
    %c0_92 = arith.constant 0 : index
    %115 = vector.load %arg7[%c0_90, %c0_91, %c0_92] : memref<1x1x10xf32, #tpu.memory_space<vmem>>, vector<1x1x10xf32>
    tpu.vector_store %arg7[%c0_90, %c0_91, %c0_92], %114 {strides = array<i32>} : memref<1x1x10xf32, #tpu.memory_space<vmem>>, vector<1x1x10xf32>,
    return
  }
  func.func @transform_0(%arg0: i32) -> (i32, i32, i32) {
    %c0_i32 = arith.constant 0 : i32
    %c0_i32_0 = arith.constant 0 : i32
    %c0_i32_1 = arith.constant 0 : i32
    return %arg0, %c0_i32, %c0_i32_0 : i32, i32, i32
  }
  func.func @transform_1(%arg0: i32) -> (i32, i32) {
    %c0_i32 = arith.constant 0 : i32
    %c0_i32_0 = arith.constant 0 : i32
    %c0_i32_1 = arith.constant 0 : i32
    return %c0_i32, %c0_i32_0 : i32, i32
  }
  func.func @transform_2(%arg0: i32) -> (i32, i32) {
    %c0_i32 = arith.constant 0 : i32
    %c0_i32_0 = arith.constant 0 : i32
    %c0_i32_1 = arith.constant 0 : i32
    return %c0_i32, %c0_i32_0 : i32, i32
  }
  func.func @transform_3(%arg0: i32) -> (i32, i32) {
    %c0_i32 = arith.constant 0 : i32
    %c0_i32_0 = arith.constant 0 : i32
    %c0_i32_1 = arith.constant 0 : i32
    return %c0_i32, %c0_i32_0 : i32, i32
  }
  func.func @transform_4(%arg0: i32) -> (i32, i32) {
    %c0_i32 = arith.constant 0 : i32
    %c0_i32_0 = arith.constant 0 : i32
    %c0_i32_1 = arith.constant 0 : i32
    return %c0_i32, %c0_i32_0 : i32, i32
  }
  func.func @transform_5(%arg0: i32) -> (i32, i32) {
    %c0_i32 = arith.constant 0 : i32
    %c0_i32_0 = arith.constant 0 : i32
    %c0_i32_1 = arith.constant 0 : i32
    return %c0_i32, %c0_i32_0 : i32, i32
  }
  func.func @transform_6(%arg0: i32) -> (i32, i32, i32) {
    %c0_i32 = arith.constant 0 : i32
    %c0_i32_0 = arith.constant 0 : i32
    %c0_i32_1 = arith.constant 0 : i32
    return %arg0, %c0_i32, %c0_i32_0 : i32, i32, i32
  }
}

</mosaic_0001>

<bundles_post_ra>
// kernel: digit_model_forward.1
= control target key start
LH: loop header
LB: loop body
LE: loop exit
PB: predicated region body
PF: predicated region fallthrough
CT: control target
= control target key end

     0   :  { %11 = vsyncpa [#allocation3], 0  ;;  %s1688_s0 = inlined_call_operand.vmem [shape: bf16[2,3,512], index: 0, kind: input, shape index: {}]   ;;  %s1689_s1 = inlined_call_operand.vmem [shape: f32[1,384], index: 1, kind: input, shape index: {}]   ;;  %s1690_s2 = inlined_call_operand.vmem [shape: bf16[32,32], index: 2, kind: input, shape index: {}]   ;;  %s1691_s3 = inlined_call_operand.vmem [shape: f32[32,1], index: 3, kind: input, shape index: {}]   ;;  %s1692_s4 = inlined_call_operand.vmem [shape: f32[32,10], index: 4, kind: input, shape index: {}]   ;;  %s1693_s5 = inlined_call_operand.vmem [shape: f32[1,10], index: 5, kind: input, shape index: {}]   ;;  %s1694_s6 = inlined_call_operand.hbm [shape: f32[2,1,10], index: 6, kind: output, shape index: {}]  }
   0x1   :  { %13 = vsyncpa [#allocation3 + $0x1], 0  ;;  %s1266_s21 = smov 0   ;;  %s1268_s22 = smov 0  }
   0x2   :  { %s1270_s23 = smov 0   ;;  %s1272_s24 = smov 0  }
   0x3 LB: > { %s1287_s25 = sadd.s32 4294967295, %s1218_s24   ;;  %s1024_s26 = sadd.s32 4294967294, %s1218_s24   ;;  %s1218_s24 = sphi %s1272_s24, %s1728_s24   ;;  %s1214_s23 = sphi %s1270_s23, %s1727_s23   ;;  %s1210_s22 = sphi %s1268_s22, %s1726_s22   ;;  %s1206_s21 = sphi %s1266_s21, %s1725_s21  }
   0x4   : > { %s1291_s27 = sadd.s32 1, %s1218_s24   ;;  %s157_s28 = sadd.s32 1, %s1214_s23 }
   0x5   : > { %s154_s29 = ssub.s32 %s1218_s24, %s1291_s27  ;;  %p167_p0 = scmp.ne.s32.totalorder %s1214_s23, %s1210_s22 }
   0x6   : > { %p155_p1 = scmp.eq.s32.totalorder %s154_s29, 0  ;;  %p168_p2 = scmp.eq.s32.totalorder %s1287_s25, 1 }
   0x7   : > { %p173_p3 = scmp.ne.s32.totalorder %s1210_s22, %s1206_s21  ;;  %p174_p4 = scmp.eq.s32.totalorder %s1024_s26, 1 }
   0x8   : > { %s1302_s30 = scalar_select %p155_p1, %s1214_s23, %s157_s28  }
   0x9   : > { %p1304_p5 = por %p168_p2, %p167_p0  ;;  %p1308_p6 = por %p174_p4, %p173_p3 }
   0xa   : > { %p1027_p7 = scmp.ge.s32.totalorder %s1218_s24, 1  ;;  %p215_p8 = scmp.lt.s32.totalorder %s1218_s24, 3 }
   0xc   : > { %p216_p9 = pnand %p1027_p7, %p215_p8 }
   0xd   : > { %p244_p10 = scmp.lt.s32.totalorder (!%p216_p9), %s1287_s25, 1  ;;  %v256_v0 = vlaneseq (!%p216_p9)  ;;  %v1220_v1 = vmov (!%p216_p9), 1983009808   ;;  %s1221_s14 = smov (!%p216_p9), 126   ;;  %vm442_vm0 = vcmask (!%p216_p9), 261120   ;;  %vm364_vm1 = vcmask (!%p216_p9), 1041408  }
   0xe   : > { %219 = sbr.rel (%p216_p9) target bundleno = 974 (0x3ce), region = 44  ;;  %v254_v2 = vunpack.c.l.s4 (!%p216_p9), %v1220_v1  ;;  %s1222_s15 = smov (!%p216_p9), 109   ;;  %vm365_vm2 = vsmask.f32 (!%p216_p9), 1280  ;;  %vm1698_vm3 = vcmask (!%p216_p9), 1039360   ;;  %vm373_vm4 = vcmask (!%p216_p9), 1044480  }
   0xf   : > { %v257_v3 = vshrl.u32 (!%p216_p9), %v256_v0, 7  ;;  %s1223_s16 = smov (!%p216_p9), 127   ;;  %s1224_s17 = smov (!%p216_p9), 110   ;;  %vm374_vm5 = vsmask.f32 (!%p216_p9), 4352  ;;  %vm1697_vm6 = vcmask (!%p216_p9), 1031168   ;;  %vm1507_vm7 = vmand (!%p216_p9), %vm364_vm1, %vm365_vm2 }
  0x10   : > { %v255_v4 = vunpack.c.0.s8 (!%p216_p9), %v254_v2  ;;  %s1225_s18 = smov (!%p216_p9), 108   ;;  %s1226_s19 = smov (!%p216_p9), 92   ;;  %vm1696_vm8 = vcmask (!%p216_p9), 900096   ;;  %vm368_vm9 = vcmask (!%p216_p9), 1042432   ;;  %vm382_vm10 = vcmask (!%p216_p9), 1047552   ;;  %vm1513_vm13 = vmand (!%p216_p9), %vm373_vm4, %vm374_vm5 }
  0x11   : > { %s1227_s20 = smov (!%p216_p9), 91   ;;  %s1228_s26 = smov (!%p216_p9), 90   ;;  %vm383_vm11 = vsmask.f32 (!%p216_p9), 7424  ;;  %vm1695_vm12 = vcmask (!%p216_p9), 891904   ;;  %vm332_vm14 = vcmask (!%p216_p9), 883712  }
  0x12   : > { %v1321_v5 = vsub.s32 (!%p216_p9), %v255_v4, %v257_v3  ;;  %vm377_vm15 = vcmask (!%p216_p9), 1045504   ;;  %vm1522_vm1 = vmand (!%p216_p9), %vm382_vm10, %vm383_vm11  ;;  %vm342_vm2 = vcmask (!%p216_p9), 752640   ;;  %vm354_vm4 = vcmask (!%p216_p9), 744448  }
  0x13   : > { %vm392_vm5 = vsmask.f32 (!%p216_p9), 2304  ;;  %vm386_vm10 = vcmask (!%p216_p9), 1040384   ;;  %vm401_vm11 = vsmask.f32 (!%p216_p9), 5376 }
  0x15   : > { %s245_s9 = scalar_select %p244_p10, %s1287_s25, 1 }
  0x17   : > { %s1044_s10 = sshll.u32 %s245_s9, 3 }
  0x18   : > { %s1319_s13 = scalar_lea.vmem %s1688_s0, %s1044_s10 }
  0x19   : > { %v251_v6 = vld [vmem:[%s1319_s13] sm:$0xf]  ;;  %v1373_v52 = vld [vmem:[%s1319_s13 + $0x4] sm:$0xf] }
  0x1a   : > { %v1325_v7 = vrot.slane %v251_v6, %v1321_v5  ;;  %v305_v8 = vcombine.low %v251_v6, %v251_v6  ;;  %v1339_v29 = vld [vmem:[%s1319_s13 + $0x2] sm:$0xf]  ;;  %v1383_v57 = vrot.slane %v1373_v52, %v1321_v5 }
  0x1b   : > { %v1345_v34 = vrot.slane %v1339_v29, %v1321_v5  ;;  %v569_v4 = vcombine.low %v1339_v29, %v1339_v29 }
  0x1c   : > { %v284_v9 = vrot.slane %v1325_v7, 5  ;;  %v312_v10 = vrot.slane %v305_v8, %v1321_v5  ;;  %v262_v11 = vshrl.u32 %v1325_v7, 16  ;;  %v265_v12 = vshll.u32 %v1325_v7, 16 }
  0x1d   : > { %v260_v16 = vcombine.high %v1325_v7, %v1325_v7  ;;  %v336_v36 = vrot.slane %v1325_v7, 7  ;;  %v1351_v39 = vshrl.u32 %v1345_v34, 16  ;;  %v1354_v40 = vshll.u32 %v1345_v34, 16 }
  0x1e   : > { %286 = vrot.lane.b32.xlu1 %v284_v9, %s1221_s14  ;;  %v313_v13 = vcombine.low %v312_v10, %v312_v10  ;;  %v264_v14 = vrot.slane %v262_v11, 6  ;;  %v267_v15 = vrot.slane %v265_v12, 7  ;;  %v292_v18 = vrot.slane %v262_v11, 3 }
  0x1f   : > { %v293_v19 = vrot.slane %v265_v12, 4  ;;  %v273_v20 = vshll.u32 %v260_v16, 16  ;;  %v285_v21 = vrot.slane %v260_v16, 5  ;;  %v320_v22 = vrot.slane %v265_v12, 1 }
  0x20   : > { %314 = vrot.lane.b32.xlu0 %v313_v13, %s1222_s15  ;;  %v268_v17 = vor.u32 %v267_v15, %v264_v14  ;;  %v270_v23 = vshrl.u32 %v260_v16, 16  ;;  %v344_v37 = vrot.slane %v262_v11, 5  ;;  %v345_v38 = vrot.slane %v265_v12, 6 }
  0x21   : > { %v294_v24 = vor.u32 %v293_v19, %v292_v18  ;;  %v321_v25 = vrot.slane %v273_v20, 1  ;;  %v322_v26 = vor.u32 %v320_v22, %v262_v11  ;;  %v296_v28 = vrot.slane %v273_v20, 4 }
  0x22   : > { %316 = vrot.lane.b32.xlu1 %v312_v10, %s1222_s15  ;;  %v295_v27 = vrot.slane %v270_v23, 3  ;;  %v272_v31 = vrot.slane %v270_v23, 6  ;;  %v275_v32 = vrot.slane %v273_v20, 7  ;;  %v1359_v42 = vcombine.high %v1345_v34, %v1345_v34 }
  0x23   : > { %v1130_v30 = vpack.i.bf16 %v321_v25, %v320_v22  ;;  %v323_v41 = vor.u32 %v321_v25, %v270_v23  ;;  %v346_v43 = vor.u32 %v345_v38, %v344_v37  ;;  %v531_v44 = vrot.slane %v1351_v39, 6 }
  0x24   : > { %277 = vrot.lane.b32.xlu0 %v268_v17, %s1223_s16  ;;  %v297_v33 = vor.u32 %v296_v28, %v295_v27  ;;  %v276_v35 = vor.u32 %v275_v32, %v272_v31  ;;  %v534_v45 = vrot.slane %v1354_v40, 7  ;;  %v337_v46 = vrot.slane %v260_v16, 7 }
  0x25   : > { %v347_v47 = vrot.slane %v270_v23, 5  ;;  %v348_v48 = vrot.slane %v273_v20, 6  ;;  %v1366_v49 = vshrl.u32 %v1359_v42, 16  ;;  %v1369_v50 = vshll.u32 %v1359_v42, 16 }
  0x26   : > { %288 = vrot.lane.b32.xlu1 %v285_v21, %s1221_s14  ;;  %v535_v51 = vor.u32 %v534_v45, %v531_v44  ;;  %v357_v56 = vcombine.low %v1325_v7, %v1325_v7  ;;  %v550_v59 = vrot.slane %v1345_v34, 5  ;;  %v557_v60 = vrot.slane %v1351_v39, 3 }
  0x27   : > { %v349_v53 = vor.u32 %v348_v48, %v347_v47  ;;  %v539_v54 = vrot.slane %v1366_v49, 6  ;;  %v542_v55 = vrot.slane %v1369_v50, 7  ;;  %v558_v61 = vrot.slane %v1354_v40, 4 }
  0x28   : > { %298 = vrot.lane.b32.xlu0 %v294_v24, %s1224_s17  ;;  %v1391_v62 = vshrl.u32 %v1383_v57, 16  ;;  %v1394_v63 = vshll.u32 %v1383_v57, 16  ;;  %v1399_v0 = vcombine.high %v1383_v57, %v1383_v57  ;;  %v551_v6 = vrot.slane %v1359_v42, 5 }
  0x29   : > { %v543_v58 = vor.u32 %v542_v55, %v539_v54  ;;  %v559_v1 = vor.u32 %v558_v61, %v557_v60  ;;  %v560_v8 = vrot.slane %v1366_v49, 3  ;;  %v561_v9 = vrot.slane %v1369_v50, 4  ;;  %v410_v60 = vld [vmem:[%s1691_s3 + $0x10] sm:$0xff]  ;;  %v409_v61 = vld [vmem:[%s1691_s3 + $0x8] sm:$0xff] }
  0x2a   : > { %328 = vrot.lane.b32.xlu1 %v322_v26, %s1225_s18  ;;  %v726_v2 = vrot.slane %v1391_v62, 6  ;;  %v729_v3 = vrot.slane %v1394_v63, 7  ;;  %v1412_v10 = vshrl.u32 %v1399_v0, 16  ;;  %v1415_v11 = vshll.u32 %v1399_v0, 16 }
  0x2b   : > { %v576_v13 = vrot.slane %v569_v4, %v1321_v5  ;;  %v562_v14 = vor.u32 %v561_v9, %v560_v8  ;;  %v745_v18 = vrot.slane %v1383_v57, 5  ;;  %v583_v19 = vrot.slane %v1354_v40, 1 }
  0x2c   : > { %1131 = vrot.lane.b32.xlu0 %v1130_v30, %s1225_s18  ;;  %v730_v12 = vor.u32 %v729_v3, %v726_v2  ;;  %v737_v15 = vrot.slane %v1415_v11, 7  ;;  %v584_v20 = vrot.slane %v1369_v50, 1  ;;  %v755_v22 = vrot.slane %v1412_v10, 3 }
  0x2d   : > { %v577_v16 = vcombine.low %v576_v13, %v576_v13  ;;  %v756_v23 = vrot.slane %v1415_v11, 4  ;;  %v746_v24 = vrot.slane %v1399_v0, 5  ;;  %v752_v25 = vrot.slane %v1391_v62, 3 }
  0x2e   : > { %300 = vrot.lane.b32.xlu1 %v297_v33, %s1224_s17  ;;  %v1135_v21 = vpack.i.bf16 %v584_v20, %v583_v19  ;;  %v753_v26 = vrot.slane %v1394_v63, 4  ;;  %v586_v29 = vor.u32 %v584_v20, %v1366_v49  ;;  %v585_v30 = vor.u32 %v583_v19, %v1351_v39 }
  0x2f   : > { %v757_v27 = vor.u32 %v756_v23, %v755_v22  ;;  %v764_v31 = vcombine.low %v1373_v52, %v1373_v52  ;;  %v599_v32 = vrot.slane %v1359_v42, 7  ;;  %v598_v33 = vrot.slane %v1345_v34, 7  ;;  %v1458_v42 = vld [vmem:[%s1690_s2] sm:$0xff]  }
  0x30   : > { %279 = vrot.lane.b32.xlu0 %v276_v35, %s1223_s16  ;;  %v754_v28 = vor.u32 %v753_v26, %v752_v25  ;;  %v609_v37 = vrot.slane %v1369_v50, 6  ;;  %1061 = vmatprep.mubr.msk.bf16.mxu0 %vm442_vm0, %v1458_v42  ;;  %v779_v44 = vrot.slane %v1415_v11, 1  ;;  %v617_v45 = vcombine.low %v1345_v34, %v1345_v34 }
  0x31   : > { %v771_v35 = vrot.slane %v764_v31, %v1321_v5  ;;  %1069 = vmatprep.mubr.msk.bf16.mxu1 %vm442_vm0, %v1458_v42  ;;  %v793_v48 = vrot.slane %v1383_v57, 7  ;;  %v801_v50 = vrot.slane %v1394_v63, 6  ;;  %v803_v54 = vrot.slane %v1412_v10, 5 }
  0x32   : > { %338 = vrot.lane.b32.xlu1 %v336_v36, %s1226_s19  ;;  %v608_v36 = vrot.slane %v1366_v49, 5  ;;  %v800_v49 = vrot.slane %v1391_v62, 5  ;;  %v804_v55 = vrot.slane %v1415_v11, 6 }
  0x33   : > { %v772_v38 = vcombine.low %v771_v35, %v771_v35 }
  0x34   : > { %330 = vrot.lane.b32.xlu0 %v323_v41, %s1225_s18  ;;  %v605_v41 = vrot.slane %v1351_v39, 5  ;;  %v610_v5 = vor.u32 %v609_v37, %v608_v36  ;;  %v802_v52 = vor.u32 %v801_v50, %v800_v49 }
  0x36   : > { %350 = vrot.lane.b32.xlu1 %v346_v43, %s1227_s20  ;;  %v606_v43 = vrot.slane %v1354_v40, 6  ;;  %v778_v40 = vrot.slane %v1394_v63, 1 }
  0x38   : > { %340 = vrot.lane.b32.xlu0 %v337_v46, %s1226_s19  ;;  %v607_v39 = vor.u32 %v606_v43, %v605_v41  ;;  %v1140_v46 = vpack.i.bf16 %v779_v44, %v778_v40  ;;  %v780_v47 = vor.u32 %v778_v40, %v1391_v62  ;;  %v411_v62 = vld [vmem:[%s1691_s3 + $0x18] sm:$0xff] }
  0x3a   : > { %544 = vrot.lane.b32.xlu1 %v535_v51, %s1223_s16  ;;  %v781_v51 = vor.u32 %v779_v44, %v1412_v10 }
  0x3c   : > { %352 = vrot.lane.b32.xlu0 %v349_v53, %s1227_s20  ;;  %v794_v53 = vrot.slane %v1399_v0, 7 }
  0x3e   : > { %358 = vrot.lane.b32.xlu1 %v357_v56, %s1228_s26  ;;  %v812_v56 = vcombine.low %v1383_v57, %v1383_v57 }
  0x40   : > { %546 = vrot.lane.b32.xlu0 %v543_v58, %s1223_s16  ;;  %v1229_v58 = vmov 0  }
  0x41   : > { %1145 = vset.pattern.permute.xlu1 %v1229_v58  ;;  %1146 = vset.pattern.permute.xlu0 %v1229_v58 }
  0x42   : > { %552 = vrot.lane.b32.xlu1 %v550_v59, %s1221_s14  ;;  %v408_v59 = vld [vmem:[%s1691_s3] sm:$0xff] }
  0x44   : > { %360 = vrot.lane.b32.xlu0 %v1325_v7, %s1228_s26  ;;  %v734_v7 = vrot.slane %v1412_v10, 6  ;;  %v250_v10 = vld [vmem:[%s1319_s13] sm:$0x3] }
  0x46   : > { %563 = vrot.lane.b32.xlu1 %v559_v1, %s1224_s17  ;;  %v738_v17 = vor.u32 %v737_v15, %v734_v7 }
  0x48   : > { %554 = vrot.lane.b32.xlu0 %v551_v6, %s1221_s14 }
  0x4a   : > { %739 = vrot.lane.b32.xlu1 %v730_v12, %s1223_s16 }
  0x4c   : > { %565 = vrot.lane.b32.xlu0 %v562_v14, %s1224_s17 }
  0x4e   : > { %578 = vrot.lane.b32.xlu1 %v577_v16, %s1222_s15 }
  0x50   : > { %741 = vrot.lane.b32.xlu0 %v738_v17, %s1223_s16 }
  0x52   : > { %747 = vrot.lane.b32.xlu1 %v745_v18, %s1221_s14 }
  0x54   : > { %580 = vrot.lane.b32.xlu0 %v576_v13, %s1222_s15 }
  0x56   : > { %1136 = vrot.lane.b32.xlu1 %v1135_v21, %s1225_s18 }
  0x58   : > { %749 = vrot.lane.b32.xlu0 %v746_v24, %s1221_s14 }
  0x5a   : > { %760 = vrot.lane.b32.xlu1 %v757_v27, %s1224_s17 }
  0x5c   : > { %758 = vrot.lane.b32.xlu0 %v754_v28, %s1224_s17 }
  0x5e   : > { %593 = vrot.lane.b32.xlu1 %v586_v29, %s1225_s18 }
  0x60   : > { %591 = vrot.lane.b32.xlu0 %v585_v30, %s1225_s18 }
  0x62   : > { %602 = vrot.lane.b32.xlu1 %v599_v32, %s1226_s19 }
  0x64   : > { %600 = vrot.lane.b32.xlu0 %v598_v33, %s1226_s19 }
  0x66   : > { %775 = vrot.lane.b32.xlu1 %v771_v35, %s1222_s15 }
  0x68   : > { %773 = vrot.lane.b32.xlu0 %v772_v38, %s1222_s15 }
  0x6a   : > { %613 = vrot.lane.b32.xlu1 %v610_v5, %s1227_s20  ;;  %v1034_v5 = vld [vmem:[%s1689_s1] ss:$0 sm:$0xff] }
  0x6c   : > { %611 = vrot.lane.b32.xlu0 %v607_v39, %s1227_s20 }
  0x6e   : > { %618 = vrot.lane.b32.xlu1 %v617_v45, %s1228_s26 }
  0x70   : > { %1141 = vrot.lane.b32.xlu0 %v1140_v46, %s1225_s18 }
  0x72   : > { %786 = vrot.lane.b32.xlu1 %v780_v47, %s1225_s18 }
  0x74   : > { %620 = vrot.lane.b32.xlu0 %v1345_v34, %s1228_s26  ;;  %v805_v34 = vor.u32 %v804_v55, %v803_v54  ;;  %v517_v54 = vld [vmem:[%s1319_s13 + $0x2] sm:$0x3] }
  0x76   : > { %795 = vrot.lane.b32.xlu1 %v793_v48, %s1226_s19  ;;  %v1556_v48 = vld [vmem:[%s1690_s2 + $0x8] sm:$0xff]  }
  0x78   : > { %788 = vrot.lane.b32.xlu0 %v781_v51, %s1225_s18 }
  0x7a   : > { %806 = vrot.lane.b32.xlu1 %v802_v52, %s1227_s20 }
  0x7c   : > { %797 = vrot.lane.b32.xlu0 %v794_v53, %s1226_s19 }
  0x7e   : > { %813 = vrot.lane.b32.xlu1 %v812_v56, %s1228_s26 }
  0x80   : > { %808 = vrot.lane.b32.xlu0 %v805_v34, %s1227_s20  ;;  %s242_s20 = sand.u32 1, %s1210_s22  }
  0x81   : > { %s243_s28 = scalar_lea.vmem [#allocation2], %s242_s20  ;;  %s957_s12 = scalar_lea.sflag [#allocation3], %s242_s20 }
  0x82   : > { %414 = vperm.xlu1 %1145, %v408_v59   ;;  %s969_s29 = sshll.u32 %s243_s28, 4  ;;  %s1647_s29 = int_to_ptr.vmem [resolvable:$true] %s969_s29 }
  0x83   : > { %s1156_s14 = scalar_lea.vmem %s1647_s29, 16 }
  0x84   : > { %815 = vrot.lane.b32.xlu0 %v1383_v57, %s1228_s26  ;;  %s1041_s26 = sshll.u32 %s1287_s25, 4  ;;  %p1157_p11 = scmp.ne.s32.totalorder %s1647_s29, %s1156_s14 }
  0x85   : > { %s1645_s11 = scalar_lea.hbm %s1694_s6, %s1041_s26  ;;  %s1230_s25 = smov [#allocation2]  }
  0x86   : > { %424 = vperm.xlu1 %1145, %v410_v60   ;;  %p1158_p12 = pnand %p1157_p11, %p1304_p5  ;;  %s1160_s15 = sshll.u32 %s1230_s25, 4  ;;  %s1161_s15 = int_to_ptr.vmem [resolvable:$false] %s1160_s15 }
  0x87   : > { %s1162_s16 = scalar_lea.vmem %s1161_s15, 32  ;;  %p1163_p0 = scmp.lt.s32.totalorder %s1647_s29, %s1161_s15 }
  0x88   : > { %419 = vperm.xlu0 %1146, %v409_v61   ;;  %p1159_p13 = pneg %p1158_p12  ;;  %p1164_p1 = scmp.lt.s32.totalorder %s1162_s16, %s1156_s14 }
  0x8a   : > { %429 = vperm.xlu1 %1145, %v411_v62   ;;  %p1165_p2 = por %p1164_p1, %p1163_p0 }
  0x8c   : > { %p1166_p3 = pnand %p1165_p2, %p1159_p13 }
  0x90   : > { %v287_v63 = vpop.permute.xlu1 %286 }
  0x92   : > { %v315_v0 = vpop.permute.xlu0 %314 }
  0x94   : > { %v317_v1 = vpop.permute.xlu1 %316 }
  0x95   : > { %v319_v21 = vsel %vm1695_vm12, %v315_v0, %v317_v1  ;;  %vm1535_vm12 = vmand %vm368_vm9, %vm392_vm5  ;;  %vm1713_vm5 = vcmask 1039360  }
  0x96   : > { %v278_v2 = vpop.permute.xlu0 %277 }
  0x98   : > { %v289_v3 = vpop.permute.xlu1 %288 }
  0x99   : > { %v291_v15 = vsel %vm1697_vm6, %v287_v63, %v289_v3  ;;  %vm1699_vm6 = vcmask 1043456  }
  0x9a   : > { %v299_v4 = vpop.permute.xlu0 %298 }
  0x9c   : > { %v329_v6 = vpop.permute.xlu1 %328 }
  0x9e   : > { %v1132_v57 = vpop.permute.xlu0 %1131 }
  0x9f   : > { %v1134_v12 = vunpack.i.h.bf16 %v1132_v57  ;;  %v1133_v13 = vunpack.i.l.bf16 %v1132_v57 }
  0xa0   : > { %v301_v8 = vpop.permute.xlu1 %300 }
  0xa1   : > { %v303_v18 = vsel %vm1696_vm8, %v299_v4, %v301_v8  ;;  %v333_v24 = vsel %vm332_vm14, %v1133_v13, %v1134_v12  ;;  %vm1700_vm8 = vcmask 736256  }
  0xa2   : > { %v280_v11 = vpop.permute.xlu0 %279 }
  0xa3   : > { %v282_v14 = vsel %vm1698_vm3, %v278_v2, %v280_v11  ;;  %vm1543_vm3 = vmand %vm377_vm15, %vm401_vm11  ;;  %vm1714_vm11 = vcmask 1031168  }
  0xa4   : > { %v367_v16 = vsel %vm1507_vm7, %v250_v10, %v282_v14  ;;  %v339_v17 = vpop.permute.xlu1 %338 }
  0xa5   : > { %v371_v19 = vsel %vm368_vm9, %v367_v16, %v291_v15 }
  0xa6   : > { %v331_v22 = vpop.permute.xlu0 %330  ;;  %v376_v23 = vsel %vm1513_vm13, %v371_v19, %v303_v18 }
  0xa7   : > { %v380_v25 = vsel %vm377_vm15, %v376_v23, %v319_v21  ;;  %v334_v38 = vsel %vm332_vm14, %v329_v6, %v331_v22 }
  0xa8   : > { %v351_v26 = vpop.permute.xlu1 %350  ;;  %v385_v27 = vsel %vm1522_vm1, %v380_v25, %v333_v24 }
  0xa9   : > { %1057 = vmatprep.subr.bf16.mxu0 %v385_v27 }
  0xaa   : > { %v341_v28 = vpop.permute.xlu0 %340  ;;  %1058 = vmatpush3.bf16.msra.mxu0 %v385_v27 }
  0xab   : > { %v343_v33 = vsel %vm342_vm2, %v339_v17, %v341_v28  ;;  %v712_v17 = vld [vmem:[%s1319_s13 + $0x4] sm:$0x3] }
  0xac   : > { %v545_v29 = vpop.permute.xlu1 %544  ;;  %v389_v41 = vsel %vm386_vm10, %v334_v38, %v343_v33 }
  0xae   : > { %v353_v30 = vpop.permute.xlu0 %352 }
  0xaf   : > { %v355_v36 = vsel %vm354_vm4, %v351_v26, %v353_v30 }
  0xb0   : > { %v359_v31 = vpop.permute.xlu1 %358  ;;  %v394_v39 = vsel %vm1535_vm12, %v389_v41, %v355_v36 }
  0xb2   : > { %v547_v32 = vpop.permute.xlu0 %546 }
  0xb3   : > { %v548_v55 = vsel %vm1713_vm5, %v545_v29, %v547_v32 }
  0xb4   : > { %v553_v37 = vpop.permute.xlu1 %552  ;;  %v623_v59 = vsel %vm1507_vm7, %v517_v54, %v548_v55 }
  0xb6   : > { %v361_v43 = vpop.permute.xlu0 %360 }
  0xb7   : > { %v363_v40 = vsel %vm1700_vm8, %v359_v31, %v361_v43  ;;  %vm1716_vm8 = vcmask 891904  }
  0xb8   : > { %v564_v44 = vpop.permute.xlu1 %563  ;;  %v398_v45 = vsel %vm1699_vm6, %v394_v39, %v363_v40  ;;  %vm1715_vm6 = vcmask 900096  }
  0xb9   : > { %v403_v46 = vsel %vm1543_vm3, %v398_v45, 0 }
  0xba   : > { %v555_v47 = vpop.permute.xlu0 %554  ;;  %1059 = vmatprep.subr.bf16.mxu0 %v403_v46 }
  0xbb   : > { %1060 = vmatpush3.bf16.msra.mxu0 %v403_v46  ;;  %v556_v56 = vsel %vm1714_vm11, %v553_v37, %v555_v47 }
  0xbc   : > { %v740_v49 = vpop.permute.xlu1 %739  ;;  %v626_v62 = vsel %vm368_vm9, %v623_v59, %v556_v56 }
  0xbe   : > { %v566_v50 = vpop.permute.xlu0 %565  ;;  %1062 = vmatmul.mubr.msk.bf16.vlgmr.msra.gmra.mrb[0].mxu0 %vm442_vm0, %v1556_v48 }
  0xbf   : > { %1077 = vmatprep.mubr.msk.bf16.mxu0 %vm442_vm0, %v1458_v42  ;;  %v567_v58 = vsel %vm1715_vm6, %v564_v44, %v566_v50  ;;  %vm1717_vm6 = vmmov %vm1713_vm5  ;;  %vm1719_vm5 = vcmask 900096  }
  0xc0   : > { %v579_v51 = vpop.permute.xlu1 %578  ;;  %v628_v0 = vsel %vm1513_vm13, %v626_v62, %v567_v58 }
  0xc2   : > { %v742_v52 = vpop.permute.xlu0 %741 }
  0xc3   : > { %v743_v18 = vsel %vm1717_vm6, %v740_v49, %v742_v52 }
  0xc4   : > { %v748_v53 = vpop.permute.xlu1 %747  ;;  %v818_v23 = vsel %vm1507_vm7, %v712_v17, %v743_v18  ;;  %vm1721_vm7 = vcmask 736256  }
  0xc6   : > { %v581_v34 = vpop.permute.xlu0 %580 }
  0xc7   : > { %v582_v60 = vsel %vm1716_vm8, %v579_v51, %v581_v34  ;;  %vm1718_vm8 = vmmov %vm1714_vm11  ;;  %vm1720_vm11 = vcmask 891904  }
  0xc8   : > { %v1137_v61 = vpop.permute.xlu1 %1136  ;;  %v631_v3 = vsel %vm377_vm15, %v628_v0, %v582_v60 }
  0xc9   : > { %v1139_v42 = vunpack.i.h.bf16 %v1137_v61  ;;  %v1138_v63 = vunpack.i.l.bf16 %v1137_v61 }
  0xca   : > { %v750_v1 = vpop.permute.xlu0 %749 }
  0xcb   : > { %v595_v2 = vsel %vm332_vm14, %v1138_v63, %v1139_v42  ;;  %v751_v19 = vsel %vm1718_vm8, %v748_v53, %v750_v1 }
  0xcc   : > { %v633_v4 = vsel %vm1522_vm1, %v631_v3, %v595_v2  ;;  %v761_v6 = vpop.permute.xlu1 %760  ;;  %v821_v26 = vsel %vm368_vm9, %v818_v23, %v751_v19  ;;  %vm1722_vm9 = vcmask 1043456  }
  0xcd   : > { %1065 = vmatprep.subr.bf16.mxu1 %v633_v4 }
  0xce   : > { %1066 = vmatpush3.bf16.msra.mxu1 %v633_v4  ;;  %v759_v57 = vpop.permute.xlu0 %758 }
  0xcf   : > { %v762_v22 = vsel %vm1719_vm5, %v759_v57, %v761_v6 }
  0xd0   : > { %v594_v8 = vpop.permute.xlu1 %593  ;;  %v823_v30 = vsel %vm1513_vm13, %v821_v26, %v762_v22  ;;  %vm1723_vm13 = vmmov %vm1721_vm7 }
  0xd2   : > { %v592_v10 = vpop.permute.xlu0 %591 }
  0xd3   : > { %v596_v33 = vsel %vm332_vm14, %v592_v10, %v594_v8 }
  0xd4   : > { %v603_v11 = vpop.permute.xlu1 %602 }
  0xd6   : > { %v601_v12 = vpop.permute.xlu0 %600 }
  0xd7   : > { %v604_v27 = vsel %vm342_vm2, %v601_v12, %v603_v11  ;;  %v1037_v12 = vld [vmem:[%s1689_s1 + $0x1] ss:$0 sm:$0xff] }
  0xd8   : > { %v776_v13 = vpop.permute.xlu1 %775  ;;  %v636_v37 = vsel %vm386_vm10, %v596_v33, %v604_v27 }
  0xda   : > { %v774_v14 = vpop.permute.xlu0 %773 }
  0xdb   : > { %v777_v24 = vsel %vm1720_vm11, %v774_v14, %v776_v13 }
  0xdc   : > { %v614_v15 = vpop.permute.xlu1 %613  ;;  %v826_v36 = vsel %vm377_vm15, %v823_v30, %v777_v24  ;;  %vm1724_vm15 = vmmov %vm1722_vm9 }
  0xde   : > { %v612_v16 = vpop.permute.xlu0 %611 }
  0xdf   : > { %v615_v31 = vsel %vm354_vm4, %v612_v16, %v614_v15 }
  0xe0   : > { %v619_v21 = vpop.permute.xlu1 %618  ;;  %v638_v43 = vsel %vm1535_vm12, %v636_v37, %v615_v31 }
  0xe2   : > { %v1142_v25 = vpop.permute.xlu0 %1141 }
  0xe3   : > { %v1144_v28 = vunpack.i.h.bf16 %v1142_v25  ;;  %v1143_v29 = vunpack.i.l.bf16 %v1142_v25 }
  0xe4   : > { %v787_v32 = vpop.permute.xlu1 %786 }
  0xe5   : > { %v790_v9 = vsel %vm332_vm14, %v1143_v29, %v1144_v28 }
  0xe6   : > { %v621_v38 = vpop.permute.xlu0 %620  ;;  %v828_v41 = vsel %vm1522_vm1, %v826_v36, %v790_v9 }
  0xe7   : > { %v622_v7 = vsel %vm1721_vm7, %v619_v21, %v621_v38  ;;  %1073 = vmatprep.subr.bf16.mxu0 %v828_v41 }
  0xe8   : > { %1074 = vmatpush3.bf16.msra.mxu0 %v828_v41  ;;  %v641_v39 = vsel %vm1722_vm9, %v638_v43, %v622_v7  ;;  %v796_v40 = vpop.permute.xlu1 %795  ;;  %v1040_v43 = vld [vmem:[%s1689_s1 + $0x2] ss:$0 sm:$0xff] }
  0xe9   : > { %v643_v44 = vsel %vm1543_vm3, %v641_v39, 0 }
  0xea   : > { %1067 = vmatprep.subr.bf16.mxu1 %v643_v44  ;;  %v789_v45 = vpop.permute.xlu0 %788 }
  0xeb   : > { %1068 = vmatpush3.bf16.msra.mxu1 %v643_v44  ;;  %v791_v20 = vsel %vm332_vm14, %v787_v32, %v789_v45 }
  0xec   : > { %v807_v47 = vpop.permute.xlu1 %806 }
  0xee   : > { %v798_v46 = vpop.permute.xlu0 %797  ;;  %1070 = vmatmul.mubr.msk.bf16.vlgmr.msra.gmra.mrb[0].mxu1 %vm442_vm0, %v1556_v48 }
  0xef   : > { %v799_v49 = vsel %vm342_vm2, %v796_v40, %v798_v46 }
  0xf0   : > { %v831_v50 = vsel %vm386_vm10, %v791_v20, %v799_v49  ;;  %v814_v54 = vpop.permute.xlu1 %813 }
  0xf2   : > { %v809_v51 = vpop.permute.xlu0 %808 }
  0xf3   : > { %v810_v52 = vsel %vm354_vm4, %v807_v47, %v809_v51 }
  0xf4   : > { %v833_v53 = vsel %vm1535_vm12, %v831_v50, %v810_v52 }
  0xf6   : > { %v816_v55 = vpop.permute.xlu0 %815 }
  0xf7   : > { %v817_v56 = vsel %vm1723_vm13, %v814_v54, %v816_v55 }
  0xf8   : > { %v836_v34 = vsel %vm1724_vm15, %v833_v53, %v817_v56 }
  0xf9   : > { %v838_v58 = vsel %vm1543_vm3, %v836_v34, 0  ;;  %vm943_vm3 = vcmask 73728  }
  0xfa   : > { %1075 = vmatprep.subr.bf16.mxu0 %v838_v58 }
  0xfb   : > { %1076 = vmatpush3.bf16.msra.mxu0 %v838_v58  ;;  %v919_v58 = vld [vmem:[%s1692_s4] sm:$0xff] }
  0xfe   : > { %1078 = vmatmul.mubr.msk.bf16.vlgmr.msra.gmra.mrb[4].mxu0 %vm442_vm0, %v1556_v48  ;;  %vm927_vm0 = vcmask 80896  }
 0x101   : > { %v415_v35 = vpop.permute.xlu1 %414 }
 0x105   : > { %v425_v42 = vpop.permute.xlu1 %424 }
 0x107   : > { %v420_v1 = vpop.permute.xlu0 %419 }
 0x109   : > { %v430_v63 = vpop.permute.xlu1 %429 }
 0x191   : > { %v1063_v59 = vpop.f32.mrb[0].mxu0 }
 0x192   : > { %v483_v60 = vpop.f32.mrb[1].mxu0  ;;  %v492_v0 = vadd.f32 %v1063_v59, %v425_v42 }
 0x193   : > { %v1064_v61 = vpop.f32.mrb[2].mxu0  ;;  %v484_v2 = vadd.f32 %v483_v60, %v415_v35 }
 0x194   : > { %v486_v62 = vpop.f32.mrb[3].mxu0  ;;  %v495_v3 = vadd.f32 %v1064_v61, %v430_v63  ;;  %v500_v6 = vmax.f32 %v492_v0, 0.0  ;;  %v920_v61 = vld [vmem:[%s1692_s4 + $0x8] sm:$0xff] }
 0x195   : > { %v487_v4 = vadd.f32 %v486_v62, %v420_v1  ;;  %v498_v8 = vmax.f32 %v484_v2, 0.0 }
 0x196   : > { %v501_v11 = vmax.f32 %v495_v3, 0.0  ;;  %v511_v16 = vmul.f32 %v1034_v5, %v500_v6 }
 0x197   : > { %v499_v15 = vmax.f32 %v487_v4, 0.0  ;;  %v509_v21 = vmul.f32 %v1034_v5, %v498_v8 }
 0x198   : > { %v512_v26 = vmul.f32 %v1034_v5, %v501_v11 }
 0x199   : > { %v510_v29 = vmul.f32 %v1034_v5, %v499_v15 }
 0x1c1   : > { %v1071_v57 = vpop.f32.mrb[0].mxu1 }
 0x1c2   : > { %v687_v48 = vadd.f32 %v1071_v57, %v425_v42  ;;  %v678_v10 = vpop.f32.mrb[1].mxu1  ;;  %v922_v57 = vld [vmem:[%s1692_s4 + $0x18] sm:$0xff] }
 0x1c3   : > { %v679_v13 = vadd.f32 %v678_v10, %v415_v35  ;;  %v1072_v14 = vpop.f32.mrb[2].mxu1 }
 0x1c4   : > { %v695_v17 = vmax.f32 %v687_v48, 0.0  ;;  %v690_v18 = vadd.f32 %v1072_v14, %v430_v63  ;;  %v681_v19 = vpop.f32.mrb[3].mxu1 }
 0x1c5   : > { %v693_v22 = vmax.f32 %v679_v13, 0.0  ;;  %v682_v23 = vadd.f32 %v681_v19, %v420_v1 }
 0x1c6   : > { %v706_v24 = vmul.f32 %v1037_v12, %v695_v17  ;;  %v696_v25 = vmax.f32 %v690_v18, 0.0 }
 0x1c7   : > { %v704_v27 = vmul.f32 %v1037_v12, %v693_v22  ;;  %v694_v28 = vmax.f32 %v682_v23, 0.0 }
 0x1c8   : > { %v710_v30 = vadd.f32 %v706_v24, %v511_v16  ;;  %v707_v31 = vmul.f32 %v1037_v12, %v696_v25 }
 0x1c9   : > { %v708_v32 = vadd.f32 %v704_v27, %v509_v21  ;;  %v705_v33 = vmul.f32 %v1037_v12, %v694_v28  ;;  %v941_v21 = vld [vmem:[%s1693_s5] sm:$0x1] }
 0x1ca   : > { %v711_v9 = vadd.f32 %v707_v31, %v512_v26 }
 0x1cb   : > { %v709_v36 = vadd.f32 %v705_v33, %v510_v29 }
 0x1d1   : > { %v1079_v37 = vpop.f32.mrb[4].mxu0 }
 0x1d2   : > { %v882_v38 = vadd.f32 %v1079_v37, %v425_v42  ;;  %v873_v41 = vpop.f32.mrb[5].mxu0 }
 0x1d3   : > { %v874_v7 = vadd.f32 %v873_v41, %v415_v35  ;;  %v1080_v39 = vpop.f32.mrb[6].mxu0 }
 0x1d4   : > { %v890_v40 = vmax.f32 %v882_v38, 0.0  ;;  %v885_v44 = vadd.f32 %v1080_v39, %v430_v63  ;;  %v876_v45 = vpop.f32.mrb[7].mxu0  ;;  %v921_v63 = vld [vmem:[%s1692_s4 + $0x10] sm:$0xff] }
 0x1d5   : > { %v888_v46 = vmax.f32 %v874_v7, 0.0  ;;  %v877_v47 = vadd.f32 %v876_v45, %v420_v1 }
 0x1d6   : > { %v901_v20 = vmul.f32 %v1040_v43, %v890_v40  ;;  %v891_v49 = vmax.f32 %v885_v44, 0.0 }
 0x1d7   : > { %v899_v50 = vmul.f32 %v1040_v43, %v888_v46  ;;  %v889_v51 = vmax.f32 %v877_v47, 0.0 }
 0x1d8   : > { %v902_v52 = vmul.f32 %v1040_v43, %v891_v49  ;;  %v905_v53 = vadd.f32 %v901_v20, %v710_v30 }
 0x1d9   : > { %v900_v54 = vmul.f32 %v1040_v43, %v889_v51  ;;  %v903_v55 = vadd.f32 %v899_v50, %v708_v32 }
 0x1da   : > { %v906_v56 = vadd.f32 %v902_v52, %v711_v9 }
 0x1db   : > { %907 = vadd.xlane.f32.xlu0 %v903_v55  ;;  %v904_v34 = vadd.f32 %v900_v54, %v709_v36 }
 0x1dd   : > { %909 = vadd.xlane.f32.xlu1 %v904_v34 }
 0x1df   : > { %911 = vadd.xlane.f32.xlu0 %v905_v53 }
 0x1e3   : > { %913 = vadd.xlane.f32.xlu0 %v906_v56 }
 0x268   : > { %v908_v59 = vpop.xlane.xlu0 %907 }
 0x269   : > { %v915_v60 = vmul.f32 0.00390625, %v908_v59 }
 0x26a   : > { %v910_v62 = vpop.xlane.xlu1 %909 }
 0x26b   : > { %v923_v35 = vmul.f32 %v919_v58, %v915_v60  ;;  %v916_v42 = vmul.f32 0.00390625, %v910_v62 }
 0x26c   : > { %v912_v0 = vpop.xlane.xlu0 %911 }
 0x26d   : > { %v924_v1 = vmul.f32 %v920_v61, %v916_v42  ;;  %v917_v2 = vmul.f32 0.00390625, %v912_v0  ;;  %v928_v3 = vsel %vm927_vm0, %v923_v35, 0.0 }
 0x26f   : > { %v929_v4 = vsel %vm927_vm0, %v924_v1, 0.0  ;;  %v925_v6 = vmul.f32 %v921_v63, %v917_v2 }
 0x270   : > { %v930_v5 = vadd.f32 %v929_v4, %v928_v3  ;;  %v914_v8 = vpop.xlane.xlu0 %913 }
 0x271   : > { %v931_v48 = vsel %vm927_vm0, %v925_v6, 0.0  ;;  %v918_v10 = vmul.f32 0.00390625, %v914_v8 }
 0x272   : > { %v932_v12 = vadd.f32 %v931_v48, %v930_v5 }
 0x273   : > { %v926_v11 = vmul.f32 %v922_v57, %v918_v10 }
 0x275   : > { %v933_v13 = vsel %vm927_vm0, %v926_v11, 0.0 }
 0x276   : > { %v934_v14 = vadd.f32 %v933_v13, %v932_v12 }
 0x278   : > { %v935_v15 = vrot.slane %v934_v14, 4 }
 0x27a   : > { %v936_v16 = vadd.f32 %v935_v15, %v934_v14 }
 0x27c   : > { %v937_v17 = vrot.slane %v936_v16, 2 }
 0x27e   : > { %v938_v18 = vadd.f32 %v937_v17, %v936_v16 }
 0x280   : > { %v939_v19 = vrot.slane %v938_v18, 1 }
 0x282   : > { %v940_v22 = vadd.f32 %v939_v19, %v938_v18 }
 0x284   : > { %v942_v23 = vadd.f32 %v941_v21, %v940_v22 }
 0x286   : > { %v944_v24 = vsel %vm943_vm3, %v942_v23, -inf }
 0x287   : > { %945 = vmax.xlane.f32.xlu1 %v944_v24 }
 0x314   : > { %v946_v25 = vpop.xlane.xlu1 %945 }
 0x315   : > { %v947_v26 = vsub.f32 %v942_v23, %v946_v25 }
 0x317   : > { %v948_v27 = vmul.f32 1.442695, %v947_v26 }
 0x319   : > { %1152 = vpow2.f32 %v948_v27 }
 0x323   : > { %v1153_v28 = vpop.eup %1152 }
 0x324   : > { %v950_v29 = vsel %vm943_vm3, %v1153_v28, 0.0 }
 0x325   : > { %951 = vadd.xlane.f32.xlu0 %v950_v29 }
 0x3b2   : > { %v952_v30 = vpop.xlane.xlu0 %951 }
 0x3b3   : > { %1154 = vrcp.f32 %v952_v30 }
 0x3bd   : > { %v1155_v31 = vpop.eup %1154 }
 0x3be   : > { %v954_v32 = vmul.f32 %v1155_v31, %v1153_v28 }
 0x3c0   : > { %955 = vst.msk [vmem:[%s243_s28] sm:$0x1] %vm943_vm3, %v954_v32 }
 0x3c1   : > { %1169 = shalt.err (!%p1166_p3)
}
 0x3c2   : > { %s1170_s17 = scalar_lea.hbm %s1645_s11, 16  ;;  %s1174_s13 = scalar_lea.hbm %s1694_s6, 32 }
 0x3c3   : > { %p1171_p4 = scmp.ne.s32.totalorder %s1645_s11, %s1170_s17  ;;  %p1175_p9 = scmp.lt.u32.totalorder %s1645_s11, %s1694_s6 }
 0x3c4   : > { %p1176_p10 = scmp.lt.u32.totalorder %s1174_s13, %s1170_s17  ;;  %p1178_p12 = scmp.lt.u32.totalorder %s1170_s17, %s1645_s11 }
 0x3c5   : > { %p1172_p7 = pnand %p1171_p4, %p1304_p5 }
 0x3c6   : > { %p1177_p11 = por %p1176_p10, %p1175_p9 }
 0x3c7   : > { %p1173_p8 = pneg %p1172_p7 }
 0x3c8   : > { %p1179_p13 = por %p1178_p12, %p1177_p11 }
 0x3ca   : > { %p1180_p0 = pnand %p1179_p13, %p1173_p8 }
 0x3cc   : > { %1183 = shalt.err (!%p1180_p0)
}
 0x3cd   : > { %1081 = dma.vmem_to_hbm [thread:$0]  (%p1304_p5), %s1647_s29, 16, %s1645_s11, %s957_s12  }
 0x3ce PF: > { %p1087_p1 = scmp.ge.s32.totalorder %s1218_s24, 2  ;;  %s981_s28 = sand.u32 1, %s1206_s21  }
 0x3cf   : > { %s982_s9 = scalar_lea.sflag [#allocation3], %s981_s28 }
 0x3d0   : > { %p1084_p2 = pnand %p1087_p1, %p1308_p6 }
 0x3d2   : > { %1201 = dma.done.wait (!%p1084_p2), %s982_s9, 16  }
 0x3d3   : > { %1203 = vsyncadd (!%p1084_p2), %s982_s9, 4294967280  ;;  %p16_p3 = scmp.ge.s32.totalorder %s1291_s27, 4   ;;  %s1725_s21 = smov %s1210_s22 }
 0x3d4   : > { %s1726_s22 = smov %s1214_s23  ;;  %s1727_s23 = smov %s1302_s30 }
 0x3d5   : > { %s1728_s24 = smov %s1291_s27  ;;  %18 = sbr.rel (!%p16_p3) target bundleno = 3 (0x3), region = 79 }
 0x3dc   :  { %986 = vsyncpa [#allocation3], 1 }
 0x3dd   :  { %988 = vsyncpa [#allocation3 + $0x1], 1 }

</bundles_post_ra>
